<compile_context>
chip_gen: v7x
topology: tpu7x:2x2x1
jax: 0.10.0
libtpu: 0.0.40
codegen_flags: <defaults>
</compile_context>

<pallas_src>
import math

import jax
import jax.numpy as jnp
from jax import lax
from jax.experimental import pallas as pl
from jax.experimental.pallas import tpu as pltpu

_LANE = 128


def _round_up(x: int, m: int) -> int:
    return ((x + m - 1) // m) * m


def _make_resample_kernel(win_half: int, tile_n: int):
    def kernel(win_blk_ref, lpos_ref, lo_ref, hi_ref, out_ref):
        # win_blk_ref: (num_tiles,) int32 SMEM  (used only by the index_maps)
        # lpos_ref   : (1, tile_n)  f32   source position local to the lo window
        # lo_ref     : (B, win_half) f32  input window, first half
        # hi_ref     : (B, win_half) f32  input window, second half
        # out_ref    : (B, tile_n)  f32   resampled output tile
        del win_blk_ref
        lp = lpos_ref[...]                                       # (1, tile_n)
        row = lax.broadcasted_iota(
            jnp.int32, (win_half, tile_n), 0).astype(jnp.float32)
        # Linear-interp "hat" weights: rows floor(p) / floor(p)+1 get
        # (1 - frac) / frac; everything else is exactly 0.
        w_lo = jnp.maximum(0.0, 1.0 - jnp.abs(row - lp))
        w_hi = jnp.maximum(0.0, 1.0 - jnp.abs(row + jnp.float32(win_half) - lp))
        acc = jnp.dot(lo_ref[...], w_lo, preferred_element_type=jnp.float32)
        acc = acc + jnp.dot(hi_ref[...], w_hi, preferred_element_type=jnp.float32)
        out_ref[...] = acc.astype(out_ref.dtype)

    return kernel


def change_sample_rate(wav, input_rate: int, output_rate: int, *, tile_n: int = 128):
    """JAX/Pallas equivalent of ChangeSampleRate.forward."""
    B = wav.shape[0]
    wav2d = wav.reshape(B, -1).astype(jnp.float32)          # wav.view(B, -1)
    L = wav2d.shape[1]
    new_length = L * output_rate // input_rate
    ratio = float(input_rate) / float(output_rate)

    # ---- static tiling parameters --------------------------------------
    # Input samples touched by one output tile: <= (tile_n - 1) * ratio + 2.
    span = int(math.ceil((tile_n - 1) * ratio)) + 2
    win_half = max(_LANE, _round_up(span, _LANE))            # K of each matmul
    n_pad = _round_up(max(new_length, 1), tile_n)            # lane-dense output
    num_tiles = n_pad // tile_n
    # Enough input blocks that (win_blk + 1) is always a valid block index.
    l_pad = ((L - 1) // win_half + 2) * win_half

    wav_pad = jnp.pad(wav2d, ((0, 0), (0, l_pad - L)))

    # ---- index math, hoisted out of the kernel (runs once in XLA) -------
    idx = jnp.arange(n_pad, dtype=jnp.float32) * jnp.float32(ratio)
    # Clamping the source position to L-1 reproduces torch's round_up clamp.
    pos = jnp.minimum(idx, jnp.float32(L - 1))               # (n_pad,)
    pos_t = pos.reshape(num_tiles, tile_n)
    win_blk = jnp.floor(pos_t[:, 0]).astype(jnp.int32) // win_half  # (num_tiles,)
    local_pos = pos_t - (win_blk * win_half).astype(jnp.float32)[:, None]
    local_pos = local_pos.reshape(1, n_pad)

    kernel = _make_resample_kernel(win_half, tile_n)
    flops = 2 * B * (2 * win_half) * n_pad
    bytes_accessed = 4 * (num_tiles * 2 * B * win_half + n_pad + B * n_pad)

    out_pad = pl.pallas_call(
        kernel,
        out_shape=jax.ShapeDtypeStruct((B, n_pad), jnp.float32),
        grid_spec=pltpu.PrefetchScalarGridSpec(
            num_scalar_prefetch=1,
            grid=(num_tiles,),
            in_specs=[
                pl.BlockSpec((1, tile_n), lambda i, wb: (0, i)),
                pl.BlockSpec((B, win_half), lambda i, wb: (0, wb[i])),
                pl.BlockSpec((B, win_half), lambda i, wb: (0, wb[i] + 1)),
            ],
            out_specs=pl.BlockSpec((B, tile_n), lambda i, wb: (0, i)),
        ),
        compiler_params=pltpu.CompilerParams(
            dimension_semantics=("parallel",)),
        cost_estimate=pl.CostEstimate(
            flops=flops, transcendentals=0, bytes_accessed=bytes_accessed),
    )(win_blk, local_pos, wav_pad, wav_pad)

    return out_pad[:, :new_length]


def _reference(wav, input_rate, output_rate):
    """Pure-JAX gather reference matching the torch module semantics."""
    B = wav.shape[0]
    w = wav.reshape(B, -1).astype(jnp.float32)
    L = w.shape[1]
    new_length = L * output_rate // input_rate
    idx = jnp.arange(new_length, dtype=jnp.float32) * jnp.float32(
        float(input_rate) / float(output_rate))
    lo = idx.astype(jnp.int32)
    hi = jnp.minimum(lo + 1, L - 1)
    f = jnp.mod(idx, 1.0)
    return w[:, lo] * (1.0 - f)[None, :] + w[:, hi] * f[None, :]


if __name__ == "__main__":
    key = jax.random.PRNGKey(0)
    # Small audio-like input: batch=2, 1 channel, 128 samples.
    x = jax.random.normal(key, (2, 1, 128), dtype=jnp.float32)

    # Exercise both downsampling (ratio > 1) and upsampling (ratio < 1,
    # multiple output tiles).
    for input_rate, output_rate in ((22050, 16000), (16000, 22050)):
        out = change_sample_rate(x, input_rate, output_rate)
        out = jax.block_until_ready(out)
        ref = _reference(x, input_rate, output_rate)
        assert out.shape == ref.shape, (out.shape, ref.shape)
        assert jnp.allclose(out, ref, atol=1e-5, rtol=1e-5), (
            input_rate, output_rate, float(jnp.max(jnp.abs(out - ref))))

    print("KERNEL_OK")
</pallas_src>

<mosaic_0001>
module attributes {stable_mosaic.version = 11 : i64} {
  func.func @kernel(%arg0: i32, %arg1: memref<1xi32, #tpu.memory_space<smem>>, %arg2: memref<1x128xf32, #tpu.memory_space<vmem>>, %arg3: memref<2x256xf32, #tpu.memory_space<vmem>>, %arg4: memref<2x256xf32, #tpu.memory_space<vmem>>, %arg5: memref<2x128xf32, #tpu.memory_space<vmem>>) attributes {dimension_semantics = [#tpu.dimension_semantics<parallel>], iteration_bounds = array<i64: 1>, scalar_prefetch = 1 : i64, scratch_operands = 0 : i64, tpu.core_type = #tpu.core_type<tc>, window_params = [{transform_indices = @transform_0, window_bounds = array<i64: 1, 128>}, {transform_indices = @transform_1, window_bounds = array<i64: 2, 256>}, {transform_indices = @transform_2, window_bounds = array<i64: 2, 256>}, {transform_indices = @transform_3, window_bounds = array<i64: 2, 128>}]} {
    %c0 = arith.constant 0 : index
    %c0_0 = arith.constant 0 : index
    %0 = vector.load %arg2[%c0, %c0_0] : memref<1x128xf32, #tpu.memory_space<vmem>>, vector<1x128xf32>
    %1 = tpu.iota {dimensions = array<i32: 0>} : vector<256x128xi32>
    %2 = arith.sitofp %1 : vector<256x128xi32> to vector<256x128xf32>
    %3 = vector.broadcast %0 : vector<1x128xf32> to vector<256x128xf32>
    %4 = arith.subf %2, %3 : vector<256x128xf32>
    %5 = math.absf %4 : vector<256x128xf32>
    %cst = arith.constant 1.000000e+00 : f32
    %6 = vector.broadcast %cst : f32 to vector<256x128xf32>
    %7 = arith.subf %6, %5 : vector<256x128xf32>
    %cst_1 = arith.constant 0.000000e+00 : f32
    %8 = vector.broadcast %cst_1 : f32 to vector<256x128xf32>
    %9 = arith.maximumf %8, %7 : vector<256x128xf32>
    %cst_2 = arith.constant 2.560000e+02 : f32
    %10 = vector.broadcast %cst_2 : f32 to vector<256x128xf32>
    %11 = arith.addf %2, %10 : vector<256x128xf32>
    %12 = vector.broadcast %0 : vector<1x128xf32> to vector<256x128xf32>
    %13 = arith.subf %11, %12 : vector<256x128xf32>
    %14 = math.absf %13 : vector<256x128xf32>
    %cst_3 = arith.constant 1.000000e+00 : f32
    %15 = vector.broadcast %cst_3 : f32 to vector<256x128xf32>
    %16 = arith.subf %15, %14 : vector<256x128xf32>
    %cst_4 = arith.constant 0.000000e+00 : f32
    %17 = vector.broadcast %cst_4 : f32 to vector<256x128xf32>
    %18 = arith.maximumf %17, %16 : vector<256x128xf32>
    %c0_5 = arith.constant 0 : index
    %c0_6 = arith.constant 0 : index
    %19 = vector.load %arg3[%c0_5, %c0_6] : memref<2x256xf32, #tpu.memory_space<vmem>>, vector<2x256xf32>
    %cst_7 = arith.constant dense<0.000000e+00> : vector<2x128xf32>
    %20 = tpu.matmul %19, %9, %cst_7 {dimension_numbers = #tpu.dot_dimension_numbers<[1], [0], [0], [1], [0, 0, 1, 1], [], []>} : vector<2x256xf32>, vector<256x128xf32>, vector<2x128xf32> -> vector<2x128xf32>
    %c0_8 = arith.constant 0 : index
    %c0_9 = arith.constant 0 : index
    %21 = vector.load %arg4[%c0_8, %c0_9] : memref<2x256xf32, #tpu.memory_space<vmem>>, vector<2x256xf32>
    %cst_10 = arith.constant dense<0.000000e+00> : vector<2x128xf32>
    %22 = tpu.matmul %21, %18, %cst_10 {dimension_numbers = #tpu.dot_dimension_numbers<[1], [0], [0], [1], [0, 0, 1, 1], [], []>} : vector<2x256xf32>, vector<256x128xf32>, vector<2x128xf32> -> vector<2x128xf32>
    %23 = arith.addf %20, %22 : vector<2x128xf32>
    %c0_11 = arith.constant 0 : index
    %c0_12 = arith.constant 0 : index
    %24 = vector.load %arg5[%c0_11, %c0_12] : memref<2x128xf32, #tpu.memory_space<vmem>>, vector<2x128xf32>
    tpu.vector_store %arg5[%c0_11, %c0_12], %23 {strides = array<i32>} : memref<2x128xf32, #tpu.memory_space<vmem>>, vector<2x128xf32>,
    return
  }
  func.func @transform_0(%arg0: i32, %arg1: memref<1xi32, #tpu.memory_space<smem>>) -> (i32, i32) {
    %c0_i32 = arith.constant 0 : i32
    %c0_i32_0 = arith.constant 0 : i32
    return %c0_i32, %arg0 : i32, i32
  }
  func.func @transform_1(%arg0: i32, %arg1: memref<1xi32, #tpu.memory_space<smem>>) -> (i32, i32) {
    %0 = arith.index_cast %arg0 : i32 to index
    %1 = memref.load %arg1[%0] : memref<1xi32, #tpu.memory_space<smem>>
    %c0_i32 = arith.constant 0 : i32
    %c0_i32_0 = arith.constant 0 : i32
    return %c0_i32, %1 : i32, i32
  }
  func.func @transform_2(%arg0: i32, %arg1: memref<1xi32, #tpu.memory_space<smem>>) -> (i32, i32) {
    %0 = arith.index_cast %arg0 : i32 to index
    %1 = memref.load %arg1[%0] : memref<1xi32, #tpu.memory_space<smem>>
    %c1_i32 = arith.constant 1 : i32
    %2 = arith.addi %1, %c1_i32 : i32
    %c0_i32 = arith.constant 0 : i32
    %c0_i32_0 = arith.constant 0 : i32
    return %c0_i32, %2 : i32, i32
  }
  func.func @transform_3(%arg0: i32, %arg1: memref<1xi32, #tpu.memory_space<smem>>) -> (i32, i32) {
    %c0_i32 = arith.constant 0 : i32
    %c0_i32_0 = arith.constant 0 : i32
    return %c0_i32, %arg0 : i32, i32
  }
}

</mosaic_0001>

<bundles_post_ra>
// kernel: tpu_custom_call.1
= control target key start
LH: loop header
LB: loop body
LE: loop exit
PB: predicated region body
PF: predicated region fallthrough
CT: control target
= control target key end

     0   :  { %10 = vsyncpa [#allocation5], 0  ;;  %s981_s0 = inlined_call_operand.<no memory space> [shape: s32[1], index: 0, kind: input, shape index: {}]   ;;  %s982_s1 = inlined_call_operand.vmem [shape: f32[1,128], index: 1, kind: input, shape index: {}]   ;;  %s983_s2 = inlined_call_operand.hbm [shape: f32[2,512], index: 2, kind: input, shape index: {}]   ;;  %s984_s3 = inlined_call_operand.vmem [shape: f32[2,512], index: 3, kind: input, shape index: {}]   ;;  %s985_s4 = inlined_call_operand.hbm [shape: f32[2,128], index: 4, kind: output, shape index: {}]  }
   0x1   :  { %11 = vsyncpa [#allocation6], 0  ;;  %s617_s17 = sshll.u32 %s981_s0, 6  ;;  %s806_s21 = smov [#allocation4]  }
   0x2   :  { %s22_s20 = scalar_lea.hbm %s983_s2, %s617_s17  ;;  %s24_s22 = sshll.u32 %s806_s21, 4  ;;  %s25_s22 = int_to_ptr.vmem [resolvable:$true] %s24_s22 }
   0x3   :  { %s756_s23 = scalar_lea.hbm %s22_s20, 64  ;;  %s758_s26 = scalar_lea.hbm %s983_s2, 128 }
   0x4   :  { %p757_p0 = scmp.ne.s32.totalorder %s22_s20, %s756_s23  ;;  %p759_p1 = scmp.lt.u32.totalorder %s22_s20, %s983_s2 }
   0x5   :  { %p760_p2 = scmp.lt.u32.totalorder %s758_s26, %s756_s23  ;;  %p762_p4 = scmp.lt.u32.totalorder %s756_s23, %s22_s20 }
   0x7   :  { %p761_p3 = por %p760_p2, %p759_p1 }
   0x9   :  { %p763_p5 = por %p762_p4, %p761_p3 }
   0xb   :  { %p764_p6 = pnand %p763_p5, %p757_p0 }
   0xd   :  { %767 = shalt.err (!%p764_p6)
}
   0xe   :  { %s768_s29 = scalar_lea.vmem %s25_s22, 64  ;;  %p773_p8 = scmp.lt.s32.totalorder %s25_s22, %s25_s22 }
   0xf   :  { %p769_p7 = scmp.ne.s32.totalorder %s25_s22, %s768_s29  ;;  %p774_p9 = scmp.lt.s32.totalorder %s768_s29, %s768_s29 }
  0x11   :  { %p775_p10 = por %p774_p9, %p773_p8 }
  0x13   :  { %p776_p11 = pnand %p775_p10, %p769_p7 }
  0x15   :  { %779 = shalt.err (!%p776_p11)
}
  0x16   :  { %27 = dma.hbm_to_vmem [thread:$0]  %s22_s20, 64, %s25_s22, [#allocation5]  }
  0x17   :  { %802 = dma.done.wait [#allocation5], 64  }
  0x18   :  { %803 = vsyncadd [#allocation5], 4294967232  ;;  %v63_v0 = vlaneseq  ;;  %v862_v14 = vld [vmem:[%s982_s1] ss:$0 sm:$0xff]  ;;  %s618_s6 = sshll.u32 %s981_s0, 1 }
  0x19   :  { %s936_s7 = sadd.s32 2, %s618_s6 }
  0x1a   :  { %v845_v1 = vshrl.u32 %v63_v0, 7  ;;  %p55_p12 = scmp.lt.s32.totalorder %s936_s7, 3 }
  0x1c   :  { %v80_v2 = vadd.s32 128, %v845_v1  ;;  %v81_v3 = vadd.s32 136, %v845_v1  ;;  %v65_v4 = vadd.s32 8, %v845_v1  ;;  %v96_v5 = vcvt.s32.f32 %v845_v1  ;;  %s987_s7 = smov (!%p55_p12, %s936_s7), 3 }
  0x1d   :  { %v82_v6 = vadd.s32 144, %v845_v1  ;;  %v83_v7 = vadd.s32 152, %v845_v1  ;;  %v854_v8 = vadd.s32 16, %v845_v1  ;;  %v857_v9 = vadd.s32 24, %v845_v1  ;;  %s613_s0 = sshll.u32 %s987_s7, 1 }
  0x1e   :  { %v112_v10 = vcvt.s32.f32 %v80_v2  ;;  %v113_v11 = vcvt.s32.f32 %v81_v3  ;;  %v97_v12 = vcvt.s32.f32 %v65_v4  ;;  %v262_v13 = vadd.f32 256.0, %v96_v5  ;;  %s58_s10 = scalar_lea.vmem %s984_s3, %s613_s0  ;;  %s807_s3 = smov [#allocation7]  }
  0x1f   :  { %v114_v15 = vcvt.s32.f32 %v82_v6  ;;  %v115_v16 = vcvt.s32.f32 %v83_v7  ;;  %v98_v17 = vcvt.s32.f32 %v854_v8  ;;  %v99_v18 = vcvt.s32.f32 %v857_v9  ;;  %s593_s11 = sshll.u32 %s807_s3, 4  ;;  %s594_s11 = int_to_ptr.vmem [resolvable:$true] %s593_s11 }
  0x20   :  { %v150_v19 = vsub.f32 %v112_v10, %v862_v14  ;;  %v151_v20 = vsub.f32 %v113_v11, %v862_v14  ;;  %v278_v21 = vadd.f32 256.0, %v112_v10  ;;  %v279_v22 = vadd.f32 256.0, %v113_v11  ;;  %s780_s12 = scalar_lea.vmem %s594_s11, 32  ;;  %p785_p0 = scmp.lt.s32.totalorder %s594_s11, %s594_s11 }
  0x21   :  { %v134_v23 = vsub.f32 %v96_v5, %v862_v14  ;;  %v135_v24 = vsub.f32 %v97_v12, %v862_v14  ;;  %v263_v25 = vadd.f32 256.0, %v97_v12  ;;  %v294_v26 = vsub.f32 %v262_v13, %v862_v14  ;;  %p781_p13 = scmp.ne.s32.totalorder %s594_s11, %s780_s12  ;;  %p786_p1 = scmp.lt.s32.totalorder %s780_s12, %s780_s12 }
  0x22   :  { %v182_v27 = vand.u32 2147483647, %v150_v19  ;;  %v183_v28 = vand.u32 2147483647, %v151_v20  ;;  %v310_v29 = vsub.f32 %v278_v21, %v862_v14  ;;  %v311_v30 = vsub.f32 %v279_v22, %v862_v14 }
  0x23   :  { %v166_v31 = vand.u32 2147483647, %v134_v23  ;;  %v167_v32 = vand.u32 2147483647, %v135_v24  ;;  %v295_v33 = vsub.f32 %v263_v25, %v862_v14  ;;  %v326_v34 = vand.u32 2147483647, %v294_v26  ;;  %p787_p2 = por %p786_p1, %p785_p0 }
  0x24   :  { %v214_v35 = vsub.f32 1.0, %v182_v27  ;;  %v215_v36 = vsub.f32 1.0, %v183_v28  ;;  %v342_v37 = vand.u32 2147483647, %v310_v29  ;;  %v343_v38 = vand.u32 2147483647, %v311_v30 }
  0x25   :  { %v198_v39 = vsub.f32 1.0, %v166_v31  ;;  %v199_v40 = vsub.f32 1.0, %v167_v32  ;;  %v327_v41 = vand.u32 2147483647, %v295_v33  ;;  %v358_v42 = vsub.f32 1.0, %v326_v34  ;;  %p788_p3 = pnand %p787_p2, %p781_p13 }
  0x26   :  { %v246_v43 = vmax.f32 %v214_v35, 0.0  ;;  %v247_v44 = vmax.f32 %v215_v36, 0.0  ;;  %v374_v45 = vsub.f32 1.0, %v342_v37  ;;  %v375_v46 = vsub.f32 1.0, %v343_v38 }
  0x27   :  { %v230_v47 = vmax.f32 %v198_v39, 0.0  ;;  %v231_v48 = vmax.f32 %v199_v40, 0.0  ;;  %v359_v49 = vsub.f32 1.0, %v327_v41  ;;  %v390_v50 = vmax.f32 %v358_v42, 0.0 }
  0x28   :  { %v722_v51 = vpack.c.bf16 %v247_v44, %v246_v43  ;;  %v406_v52 = vmax.f32 %v374_v45, 0.0  ;;  %v407_v53 = vmax.f32 %v375_v46, 0.0  ;;  %v152_v54 = vsub.f32 %v114_v15, %v862_v14 }
  0x29   :  { %v724_v55 = vpack.c.bf16 %v231_v48, %v230_v47  ;;  %v391_v56 = vmax.f32 %v359_v49, 0.0  ;;  %v153_v57 = vsub.f32 %v115_v16, %v862_v14  ;;  %v280_v58 = vadd.f32 256.0, %v114_v15 }
  0x2a   :  { %723 = vmatprep.subr.bf16.mxu1 %v722_v51  ;;  %v690_v59 = vpack.c.bf16 %v407_v53, %v406_v52  ;;  %v184_v60 = vand.u32 2147483647, %v152_v54  ;;  %v281_v61 = vadd.f32 256.0, %v115_v16  ;;  %v136_v62 = vsub.f32 %v98_v17, %v862_v14 }
  0x2b   :  { %725 = vmatpush3.bf16.msra.mxu1 %v724_v55  ;;  %v692_v63 = vpack.c.bf16 %v391_v56, %v390_v50  ;;  %v185_v0 = vand.u32 2147483647, %v153_v57  ;;  %v312_v2 = vsub.f32 %v280_v58, %v862_v14  ;;  %v137_v3 = vsub.f32 %v99_v18, %v862_v14 }
  0x2c   :  { %691 = vmatprep.subr.bf16.mxu0 %v690_v59  ;;  %v216_v4 = vsub.f32 1.0, %v184_v60  ;;  %v313_v5 = vsub.f32 %v281_v61, %v862_v14  ;;  %v168_v6 = vand.u32 2147483647, %v136_v62  ;;  %v264_v7 = vadd.f32 256.0, %v98_v17 }
  0x2d   :  { %693 = vmatpush3.bf16.msra.mxu0 %v692_v63  ;;  %v217_v8 = vsub.f32 1.0, %v185_v0  ;;  %v344_v9 = vand.u32 2147483647, %v312_v2  ;;  %v169_v10 = vand.u32 2147483647, %v137_v3  ;;  %v265_v11 = vadd.f32 256.0, %v99_v18 }
  0x2e   :  { %v248_v12 = vmax.f32 %v216_v4, 0.0  ;;  %v345_v13 = vand.u32 2147483647, %v313_v5  ;;  %v200_v15 = vsub.f32 1.0, %v168_v6  ;;  %v296_v16 = vsub.f32 %v264_v7, %v862_v14 }
  0x2f   :  { %v249_v19 = vmax.f32 %v217_v8, 0.0  ;;  %v376_v20 = vsub.f32 1.0, %v344_v9  ;;  %v201_v21 = vsub.f32 1.0, %v169_v10  ;;  %v297_v22 = vsub.f32 %v265_v11, %v862_v14 }
  0x30   :  { %v377_v23 = vsub.f32 1.0, %v345_v13  ;;  %v232_v24 = vmax.f32 %v200_v15, 0.0  ;;  %v328_v25 = vand.u32 2147483647, %v296_v16  ;;  %v84_v17 = vadd.s32 160, %v845_v1 }
  0x31   :  { %v726_v26 = vpack.c.bf16 %v249_v19, %v248_v12  ;;  %v408_v27 = vmax.f32 %v376_v20, 0.0  ;;  %v233_v28 = vmax.f32 %v201_v21, 0.0  ;;  %v329_v29 = vand.u32 2147483647, %v297_v22 }
  0x32   :  { %v409_v18 = vmax.f32 %v377_v23, 0.0  ;;  %v360_v30 = vsub.f32 1.0, %v328_v25  ;;  %v85_v31 = vadd.s32 168, %v845_v1  ;;  %v116_v32 = vcvt.s32.f32 %v84_v17 }
  0x33   :  { %727 = vmatprep.subr.bf16.mxu1 %v726_v26  ;;  %v728_v33 = vpack.c.bf16 %v233_v28, %v232_v24  ;;  %v361_v34 = vsub.f32 1.0, %v329_v29  ;;  %v68_v35 = vadd.s32 32, %v845_v1  ;;  %v69_v36 = vadd.s32 40, %v845_v1 }
  0x34   :  { %v694_v37 = vpack.c.bf16 %v409_v18, %v408_v27  ;;  %v392_v38 = vmax.f32 %v360_v30, 0.0  ;;  %v117_v39 = vcvt.s32.f32 %v85_v31  ;;  %v154_v40 = vsub.f32 %v116_v32, %v862_v14 }
  0x35   :  { %729 = vmatpush3.bf16.msra.mxu1 %v728_v33  ;;  %v393_v41 = vmax.f32 %v361_v34, 0.0  ;;  %v282_v42 = vadd.f32 256.0, %v116_v32  ;;  %v100_v43 = vcvt.s32.f32 %v68_v35  ;;  %v101_v44 = vcvt.s32.f32 %v69_v36 }
  0x36   :  { %695 = vmatprep.subr.bf16.mxu0 %v694_v37  ;;  %v155_v45 = vsub.f32 %v117_v39, %v862_v14  ;;  %v186_v46 = vand.u32 2147483647, %v154_v40  ;;  %v283_v47 = vadd.f32 256.0, %v117_v39  ;;  %v86_v48 = vadd.s32 176, %v845_v1 }
  0x37   :  { %v696_v49 = vpack.c.bf16 %v393_v41, %v392_v38  ;;  %v314_v50 = vsub.f32 %v282_v42, %v862_v14  ;;  %v138_v51 = vsub.f32 %v100_v43, %v862_v14  ;;  %v139_v52 = vsub.f32 %v101_v44, %v862_v14 }
  0x38   :  { %v187_v53 = vand.u32 2147483647, %v155_v45  ;;  %v218_v54 = vsub.f32 1.0, %v186_v46  ;;  %v315_v55 = vsub.f32 %v283_v47, %v862_v14  ;;  %v266_v56 = vadd.f32 256.0, %v100_v43 }
  0x39   :  { %697 = vmatpush3.bf16.msra.mxu0 %v696_v49  ;;  %v346_v57 = vand.u32 2147483647, %v314_v50  ;;  %v170_v58 = vand.u32 2147483647, %v138_v51  ;;  %v171_v59 = vand.u32 2147483647, %v139_v52  ;;  %v118_v60 = vcvt.s32.f32 %v86_v48 }
  0x3a   :  { %v219_v61 = vsub.f32 1.0, %v187_v53  ;;  %v250_v62 = vmax.f32 %v218_v54, 0.0  ;;  %v347_v63 = vand.u32 2147483647, %v315_v55  ;;  %v267_v0 = vadd.f32 256.0, %v101_v44 }
  0x3b   :  { %v378_v2 = vsub.f32 1.0, %v346_v57  ;;  %v202_v3 = vsub.f32 1.0, %v170_v58  ;;  %v203_v4 = vsub.f32 1.0, %v171_v59  ;;  %v298_v5 = vsub.f32 %v266_v56, %v862_v14 }
  0x3c   :  { %v251_v6 = vmax.f32 %v219_v61, 0.0  ;;  %v379_v7 = vsub.f32 1.0, %v347_v63  ;;  %v299_v8 = vsub.f32 %v267_v0, %v862_v14  ;;  %v87_v9 = vadd.s32 184, %v845_v1 }
  0x3d   :  { %v410_v10 = vmax.f32 %v378_v2, 0.0  ;;  %v234_v11 = vmax.f32 %v202_v3, 0.0  ;;  %v235_v12 = vmax.f32 %v203_v4, 0.0  ;;  %v330_v13 = vand.u32 2147483647, %v298_v5 }
  0x3e   :  { %v730_v15 = vpack.c.bf16 %v251_v6, %v250_v62  ;;  %v411_v16 = vmax.f32 %v379_v7, 0.0  ;;  %v331_v19 = vand.u32 2147483647, %v299_v8  ;;  %v119_v20 = vcvt.s32.f32 %v87_v9 }
  0x3f   :  { %v732_v21 = vpack.c.bf16 %v235_v12, %v234_v11  ;;  %v362_v22 = vsub.f32 1.0, %v330_v13  ;;  %v156_v23 = vsub.f32 %v118_v60, %v862_v14  ;;  %v284_v24 = vadd.f32 256.0, %v118_v60 }
  0x40   :  { %731 = vmatprep.subr.bf16.mxu1 %v730_v15  ;;  %v698_v25 = vpack.c.bf16 %v411_v16, %v410_v10  ;;  %v363_v17 = vsub.f32 1.0, %v331_v19  ;;  %v157_v26 = vsub.f32 %v119_v20, %v862_v14  ;;  %v285_v27 = vadd.f32 256.0, %v119_v20 }
  0x41   :  { %733 = vmatpush3.bf16.msra.mxu1 %v732_v21  ;;  %v394_v28 = vmax.f32 %v362_v22, 0.0  ;;  %v188_v29 = vand.u32 2147483647, %v156_v23  ;;  %v316_v18 = vsub.f32 %v284_v24, %v862_v14  ;;  %v70_v30 = vadd.s32 48, %v845_v1 }
  0x42   :  { %699 = vmatprep.subr.bf16.mxu0 %v698_v25  ;;  %v395_v31 = vmax.f32 %v363_v17, 0.0  ;;  %v189_v32 = vand.u32 2147483647, %v157_v26  ;;  %v317_v33 = vsub.f32 %v285_v27, %v862_v14  ;;  %v71_v34 = vadd.s32 56, %v845_v1 }
  0x43   :  { %v220_v35 = vsub.f32 1.0, %v188_v29  ;;  %v348_v36 = vand.u32 2147483647, %v316_v18  ;;  %v102_v37 = vcvt.s32.f32 %v70_v30  ;;  %v88_v38 = vadd.s32 192, %v845_v1 }
  0x44   :  { %v700_v39 = vpack.c.bf16 %v395_v31, %v394_v28  ;;  %v221_v40 = vsub.f32 1.0, %v189_v32  ;;  %v349_v41 = vand.u32 2147483647, %v317_v33  ;;  %v103_v42 = vcvt.s32.f32 %v71_v34 }
  0x45   :  { %v252_v43 = vmax.f32 %v220_v35, 0.0  ;;  %v380_v44 = vsub.f32 1.0, %v348_v36  ;;  %v140_v45 = vsub.f32 %v102_v37, %v862_v14  ;;  %v268_v46 = vadd.f32 256.0, %v102_v37 }
  0x46   :  { %701 = vmatpush3.bf16.msra.mxu0 %v700_v39  ;;  %v253_v47 = vmax.f32 %v221_v40, 0.0  ;;  %v381_v48 = vsub.f32 1.0, %v349_v41  ;;  %v141_v49 = vsub.f32 %v103_v42, %v862_v14  ;;  %v269_v50 = vadd.f32 256.0, %v103_v42 }
  0x47   :  { %v412_v51 = vmax.f32 %v380_v44, 0.0  ;;  %v172_v52 = vand.u32 2147483647, %v140_v45  ;;  %v300_v53 = vsub.f32 %v268_v46, %v862_v14  ;;  %v89_v54 = vadd.s32 200, %v845_v1 }
  0x48   :  { %v734_v55 = vpack.c.bf16 %v253_v47, %v252_v43  ;;  %v413_v56 = vmax.f32 %v381_v48, 0.0  ;;  %v173_v57 = vand.u32 2147483647, %v141_v49  ;;  %v301_v58 = vsub.f32 %v269_v50, %v862_v14 }
  0x49   :  { %v204_v59 = vsub.f32 1.0, %v172_v52  ;;  %v332_v60 = vand.u32 2147483647, %v300_v53  ;;  %v120_v61 = vcvt.s32.f32 %v88_v38  ;;  %v121_v62 = vcvt.s32.f32 %v89_v54 }
  0x4a   :  { %735 = vmatprep.subr.bf16.mxu1 %v734_v55  ;;  %v702_v63 = vpack.c.bf16 %v413_v56, %v412_v51  ;;  %v205_v0 = vsub.f32 1.0, %v173_v57  ;;  %v333_v2 = vand.u32 2147483647, %v301_v58  ;;  %v72_v3 = vadd.s32 64, %v845_v1 }
  0x4b   :  { %v236_v4 = vmax.f32 %v204_v59, 0.0  ;;  %v364_v5 = vsub.f32 1.0, %v332_v60  ;;  %v158_v6 = vsub.f32 %v120_v61, %v862_v14  ;;  %v159_v7 = vsub.f32 %v121_v62, %v862_v14 }
  0x4c   :  { %703 = vmatprep.subr.bf16.mxu0 %v702_v63  ;;  %v237_v8 = vmax.f32 %v205_v0, 0.0  ;;  %v365_v9 = vsub.f32 1.0, %v333_v2  ;;  %v286_v10 = vadd.f32 256.0, %v120_v61  ;;  %v287_v11 = vadd.f32 256.0, %v121_v62 }
  0x4d   :  { %v396_v12 = vmax.f32 %v364_v5, 0.0  ;;  %v190_v13 = vand.u32 2147483647, %v158_v6  ;;  %v191_v15 = vand.u32 2147483647, %v159_v7  ;;  %v73_v16 = vadd.s32 72, %v845_v1 }
  0x4e   :  { %v736_v19 = vpack.c.bf16 %v237_v8, %v236_v4  ;;  %v397_v20 = vmax.f32 %v365_v9, 0.0  ;;  %v318_v21 = vsub.f32 %v286_v10, %v862_v14  ;;  %v319_v22 = vsub.f32 %v287_v11, %v862_v14 }
  0x4f   :  { %v222_v23 = vsub.f32 1.0, %v190_v13  ;;  %v223_v24 = vsub.f32 1.0, %v191_v15  ;;  %v104_v25 = vcvt.s32.f32 %v72_v3  ;;  %v105_v17 = vcvt.s32.f32 %v73_v16 }
  0x50   :  { %737 = vmatpush3.bf16.msra.mxu1 %v736_v19  ;;  %v704_v26 = vpack.c.bf16 %v397_v20, %v396_v12  ;;  %v350_v27 = vand.u32 2147483647, %v318_v21  ;;  %v351_v28 = vand.u32 2147483647, %v319_v22  ;;  %v90_v29 = vadd.s32 208, %v845_v1 }
  0x51   :  { %v254_v18 = vmax.f32 %v222_v23, 0.0  ;;  %v255_v30 = vmax.f32 %v223_v24, 0.0  ;;  %v142_v31 = vsub.f32 %v104_v25, %v862_v14  ;;  %v143_v32 = vsub.f32 %v105_v17, %v862_v14 }
  0x52   :  { %705 = vmatpush3.bf16.msra.mxu0 %v704_v26  ;;  %v382_v33 = vsub.f32 1.0, %v350_v27  ;;  %v383_v34 = vsub.f32 1.0, %v351_v28  ;;  %v270_v35 = vadd.f32 256.0, %v104_v25  ;;  %v271_v36 = vadd.f32 256.0, %v105_v17 }
  0x53   :  { %v738_v37 = vpack.c.bf16 %v255_v30, %v254_v18  ;;  %v174_v38 = vand.u32 2147483647, %v142_v31  ;;  %v175_v39 = vand.u32 2147483647, %v143_v32  ;;  %v91_v40 = vadd.s32 216, %v845_v1 }
  0x54   :  { %v414_v41 = vmax.f32 %v382_v33, 0.0  ;;  %v415_v42 = vmax.f32 %v383_v34, 0.0  ;;  %v302_v43 = vsub.f32 %v270_v35, %v862_v14  ;;  %v303_v44 = vsub.f32 %v271_v36, %v862_v14 }
  0x55   :  { %739 = vmatprep.subr.bf16.mxu1 %v738_v37  ;;  %v206_v45 = vsub.f32 1.0, %v174_v38  ;;  %v207_v46 = vsub.f32 1.0, %v175_v39  ;;  %v122_v47 = vcvt.s32.f32 %v90_v29  ;;  %v123_v48 = vcvt.s32.f32 %v91_v40 }
  0x56   :  { %v706_v49 = vpack.c.bf16 %v415_v42, %v414_v41  ;;  %v334_v50 = vand.u32 2147483647, %v302_v43  ;;  %v335_v51 = vand.u32 2147483647, %v303_v44  ;;  %v74_v52 = vadd.s32 80, %v845_v1 }
  0x57   :  { %v238_v53 = vmax.f32 %v206_v45, 0.0  ;;  %v239_v54 = vmax.f32 %v207_v46, 0.0  ;;  %v160_v55 = vsub.f32 %v122_v47, %v862_v14  ;;  %v161_v56 = vsub.f32 %v123_v48, %v862_v14 }
  0x58   :  { %707 = vmatprep.subr.bf16.mxu0 %v706_v49  ;;  %v366_v57 = vsub.f32 1.0, %v334_v50  ;;  %v367_v58 = vsub.f32 1.0, %v335_v51  ;;  %v288_v59 = vadd.f32 256.0, %v122_v47  ;;  %v289_v60 = vadd.f32 256.0, %v123_v48 }
  0x59   :  { %v740_v61 = vpack.c.bf16 %v239_v54, %v238_v53  ;;  %v192_v62 = vand.u32 2147483647, %v160_v55  ;;  %v193_v63 = vand.u32 2147483647, %v161_v56  ;;  %v75_v0 = vadd.s32 88, %v845_v1 }
  0x5a   :  { %v398_v2 = vmax.f32 %v366_v57, 0.0  ;;  %v399_v3 = vmax.f32 %v367_v58, 0.0  ;;  %v320_v4 = vsub.f32 %v288_v59, %v862_v14  ;;  %v321_v5 = vsub.f32 %v289_v60, %v862_v14 }
  0x5b   :  { %741 = vmatpush3.bf16.msra.mxu1 %v740_v61  ;;  %v224_v6 = vsub.f32 1.0, %v192_v62  ;;  %v225_v7 = vsub.f32 1.0, %v193_v63  ;;  %v106_v8 = vcvt.s32.f32 %v74_v52  ;;  %v107_v9 = vcvt.s32.f32 %v75_v0 }
  0x5c   :  { %v708_v10 = vpack.c.bf16 %v399_v3, %v398_v2  ;;  %v352_v11 = vand.u32 2147483647, %v320_v4  ;;  %v353_v12 = vand.u32 2147483647, %v321_v5  ;;  %v92_v13 = vadd.s32 224, %v845_v1 }
  0x5d   :  { %v256_v15 = vmax.f32 %v224_v6, 0.0  ;;  %v257_v16 = vmax.f32 %v225_v7, 0.0  ;;  %v144_v19 = vsub.f32 %v106_v8, %v862_v14  ;;  %v145_v20 = vsub.f32 %v107_v9, %v862_v14 }
  0x5e   :  { %709 = vmatpush3.bf16.msra.mxu0 %v708_v10  ;;  %v384_v21 = vsub.f32 1.0, %v352_v11  ;;  %v385_v22 = vsub.f32 1.0, %v353_v12  ;;  %v272_v23 = vadd.f32 256.0, %v106_v8  ;;  %v273_v24 = vadd.f32 256.0, %v107_v9 }
  0x5f   :  { %v742_v25 = vpack.c.bf16 %v257_v16, %v256_v15  ;;  %v176_v17 = vand.u32 2147483647, %v144_v19  ;;  %v177_v26 = vand.u32 2147483647, %v145_v20  ;;  %v93_v27 = vadd.s32 232, %v845_v1 }
  0x60   :  { %v416_v28 = vmax.f32 %v384_v21, 0.0  ;;  %v417_v29 = vmax.f32 %v385_v22, 0.0  ;;  %v304_v18 = vsub.f32 %v272_v23, %v862_v14  ;;  %v305_v30 = vsub.f32 %v273_v24, %v862_v14 }
  0x61   :  { %743 = vmatprep.subr.bf16.mxu1 %v742_v25  ;;  %v208_v31 = vsub.f32 1.0, %v176_v17  ;;  %v209_v32 = vsub.f32 1.0, %v177_v26  ;;  %v124_v33 = vcvt.s32.f32 %v92_v13  ;;  %v125_v34 = vcvt.s32.f32 %v93_v27 }
  0x62   :  { %v710_v35 = vpack.c.bf16 %v417_v29, %v416_v28  ;;  %v336_v36 = vand.u32 2147483647, %v304_v18  ;;  %v337_v37 = vand.u32 2147483647, %v305_v30  ;;  %v76_v38 = vadd.s32 96, %v845_v1 }
  0x63   :  { %v240_v39 = vmax.f32 %v208_v31, 0.0  ;;  %v241_v40 = vmax.f32 %v209_v32, 0.0  ;;  %v162_v41 = vsub.f32 %v124_v33, %v862_v14  ;;  %v163_v42 = vsub.f32 %v125_v34, %v862_v14  ;;  %v616_v18 = vld.sshfl [vmem:[#allocation4] sm:$0x33 pattern:$0x76325410] }
  0x64   :  { %711 = vmatprep.subr.bf16.mxu0 %v710_v35  ;;  %v368_v43 = vsub.f32 1.0, %v336_v36  ;;  %v369_v44 = vsub.f32 1.0, %v337_v37  ;;  %v290_v45 = vadd.f32 256.0, %v124_v33  ;;  %v291_v46 = vadd.f32 256.0, %v125_v34 }
  0x65   :  { %v744_v47 = vpack.c.bf16 %v241_v40, %v240_v39  ;;  %v194_v48 = vand.u32 2147483647, %v162_v41  ;;  %v195_v49 = vand.u32 2147483647, %v163_v42  ;;  %v77_v50 = vadd.s32 104, %v845_v1 }
  0x66   :  { %v400_v51 = vmax.f32 %v368_v43, 0.0  ;;  %v401_v52 = vmax.f32 %v369_v44, 0.0  ;;  %v322_v53 = vsub.f32 %v290_v45, %v862_v14  ;;  %v323_v54 = vsub.f32 %v291_v46, %v862_v14  ;;  %v615_v46 = vld.sshfl [vmem:[%s58_s10] sm:$0x33 pattern:$0x76325410] }
  0x67   :  { %745 = vmatpush3.bf16.msra.mxu1 %v744_v47  ;;  %v226_v55 = vsub.f32 1.0, %v194_v48  ;;  %v227_v56 = vsub.f32 1.0, %v195_v49  ;;  %v108_v57 = vcvt.s32.f32 %v76_v38  ;;  %v109_v58 = vcvt.s32.f32 %v77_v50 }
  0x68   :  { %v712_v59 = vpack.c.bf16 %v401_v52, %v400_v51  ;;  %v354_v60 = vand.u32 2147483647, %v322_v53  ;;  %v355_v61 = vand.u32 2147483647, %v323_v54  ;;  %v94_v62 = vadd.s32 240, %v845_v1 }
  0x69   :  { %v258_v63 = vmax.f32 %v226_v55, 0.0  ;;  %v259_v0 = vmax.f32 %v227_v56, 0.0  ;;  %v146_v2 = vsub.f32 %v108_v57, %v862_v14  ;;  %v147_v3 = vsub.f32 %v109_v58, %v862_v14 }
  0x6a   :  { %713 = vmatpush3.bf16.msra.mxu0 %v712_v59  ;;  %v386_v4 = vsub.f32 1.0, %v354_v60  ;;  %v387_v5 = vsub.f32 1.0, %v355_v61  ;;  %v274_v6 = vadd.f32 256.0, %v108_v57  ;;  %v275_v7 = vadd.f32 256.0, %v109_v58 }
  0x6b   :  { %v746_v8 = vpack.c.bf16 %v259_v0, %v258_v63  ;;  %v178_v9 = vand.u32 2147483647, %v146_v2  ;;  %v179_v10 = vand.u32 2147483647, %v147_v3  ;;  %v95_v11 = vadd.s32 248, %v845_v1 }
  0x6c   :  { %v418_v12 = vmax.f32 %v386_v4, 0.0  ;;  %v419_v13 = vmax.f32 %v387_v5, 0.0  ;;  %v306_v15 = vsub.f32 %v274_v6, %v862_v14  ;;  %v307_v16 = vsub.f32 %v275_v7, %v862_v14 }
  0x6d   :  { %747 = vmatprep.subr.bf16.mxu1 %v746_v8  ;;  %v210_v19 = vsub.f32 1.0, %v178_v9  ;;  %v211_v20 = vsub.f32 1.0, %v179_v10  ;;  %v126_v21 = vcvt.s32.f32 %v94_v62  ;;  %v127_v22 = vcvt.s32.f32 %v95_v11 }
  0x6e   :  { %v714_v23 = vpack.c.bf16 %v419_v13, %v418_v12  ;;  %v338_v24 = vand.u32 2147483647, %v306_v15  ;;  %v339_v25 = vand.u32 2147483647, %v307_v16  ;;  %v78_v17 = vadd.s32 112, %v845_v1 }
  0x6f   :  { %v242_v26 = vmax.f32 %v210_v19, 0.0  ;;  %v243_v27 = vmax.f32 %v211_v20, 0.0  ;;  %v164_v28 = vsub.f32 %v126_v21, %v862_v14  ;;  %v165_v29 = vsub.f32 %v127_v22, %v862_v14 }
  0x70   :  { %715 = vmatprep.subr.bf16.mxu0 %v714_v23  ;;  %v370_v30 = vsub.f32 1.0, %v338_v24  ;;  %v371_v31 = vsub.f32 1.0, %v339_v25  ;;  %v292_v32 = vadd.f32 256.0, %v126_v21  ;;  %v293_v33 = vadd.f32 256.0, %v127_v22 }
  0x71   :  { %v748_v34 = vpack.c.bf16 %v243_v27, %v242_v26  ;;  %v196_v35 = vand.u32 2147483647, %v164_v28  ;;  %v197_v36 = vand.u32 2147483647, %v165_v29  ;;  %v79_v37 = vadd.s32 120, %v845_v1 }
  0x72   :  { %v402_v38 = vmax.f32 %v370_v30, 0.0  ;;  %v403_v39 = vmax.f32 %v371_v31, 0.0  ;;  %v324_v40 = vsub.f32 %v292_v32, %v862_v14  ;;  %v325_v41 = vsub.f32 %v293_v33, %v862_v14 }
  0x73   :  { %749 = vmatpush3.bf16.msra.mxu1 %v748_v34  ;;  %v228_v42 = vsub.f32 1.0, %v196_v35  ;;  %v229_v43 = vsub.f32 1.0, %v197_v36  ;;  %v110_v44 = vcvt.s32.f32 %v78_v17  ;;  %v111_v45 = vcvt.s32.f32 %v79_v37 }
  0x74   :  { %v716_v47 = vpack.c.bf16 %v403_v39, %v402_v38  ;;  %v356_v48 = vand.u32 2147483647, %v324_v40  ;;  %v357_v49 = vand.u32 2147483647, %v325_v41  ;;  %v513_v50 = vcombine.high %v616_v18, %v616_v18 }
  0x75   :  { %v260_v51 = vmax.f32 %v228_v42, 0.0  ;;  %v261_v52 = vmax.f32 %v229_v43, 0.0  ;;  %v148_v1 = vsub.f32 %v110_v44, %v862_v14  ;;  %v149_v53 = vsub.f32 %v111_v45, %v862_v14 }
  0x76   :  { %717 = vmatpush3.bf16.msra.mxu0 %v716_v47  ;;  %v388_v54 = vsub.f32 1.0, %v356_v48  ;;  %v389_v55 = vsub.f32 1.0, %v357_v49  ;;  %v276_v56 = vadd.f32 256.0, %v110_v44  ;;  %v277_v57 = vadd.f32 256.0, %v111_v45  ;;  %580 = vmatprep.mubr.f32.mxu1 %v513_v50 }
  0x77   :  { %v750_v58 = vpack.c.bf16 %v261_v52, %v260_v51  ;;  %v180_v59 = vand.u32 2147483647, %v148_v1  ;;  %v181_v60 = vand.u32 2147483647, %v149_v53  ;;  %v432_v61 = vcombine.high %v615_v46, %v615_v46 }
  0x78   :  { %v420_v62 = vmax.f32 %v388_v54, 0.0  ;;  %v421_v63 = vmax.f32 %v389_v55, 0.0  ;;  %v308_v0 = vsub.f32 %v276_v56, %v862_v14  ;;  %v309_v2 = vsub.f32 %v277_v57, %v862_v14 }
  0x79   :  { %751 = vmatprep.subr.bf16.mxu1 %v750_v58  ;;  %v212_v3 = vsub.f32 1.0, %v180_v59  ;;  %v213_v4 = vsub.f32 1.0, %v181_v60  ;;  %499 = vmatprep.mubr.f32.mxu0 %v432_v61 }
  0x7a   :  { %v718_v5 = vpack.c.bf16 %v421_v63, %v420_v62  ;;  %v340_v6 = vand.u32 2147483647, %v308_v0  ;;  %v341_v7 = vand.u32 2147483647, %v309_v2 }
  0x7b   :  { %v244_v8 = vmax.f32 %v212_v3, 0.0  ;;  %v245_v9 = vmax.f32 %v213_v4, 0.0 }
  0x7c   :  { %719 = vmatprep.subr.bf16.mxu0 %v718_v5  ;;  %v372_v10 = vsub.f32 1.0, %v340_v6  ;;  %v373_v11 = vsub.f32 1.0, %v341_v7 }
  0x7d   :  { %v752_v12 = vpack.c.bf16 %v245_v9, %v244_v8 }
  0x7e   :  { %v404_v13 = vmax.f32 %v372_v10, 0.0  ;;  %v405_v15 = vmax.f32 %v373_v11, 0.0 }
  0x7f   :  { %753 = vmatpush3.bf16.msra.mxu1 %v752_v12 }
  0x80   :  { %v720_v16 = vpack.c.bf16 %v405_v15, %v404_v13 }
  0x82   :  { %721 = vmatpush3.bf16.msra.mxu0 %v720_v16  ;;  %581 = vmatmul.mubr.f32.vlgmr.msra.gmra.mrb[0].mxu1 %v616_v18 }
  0x85   :  { %500 = vmatmul.mubr.f32.vlgmr.msra.gmra.mrb[0].mxu0 %v615_v46 }
 0x155   :  { %v687_v14 = vpop.f32.mrb[0].mxu1 }
 0x156   :  { %v688_v19 = vpop.f32.mrb[1].mxu1 }
 0x157   :  { %v689_v20 = vadd.f32 %v688_v19, %v687_v14 }
 0x158   :  { %v652_v21 = vpop.f32.mrb[0].mxu0 }
 0x159   :  { %v653_v22 = vpop.f32.mrb[1].mxu0 }
 0x15a   :  { %v654_v23 = vadd.f32 %v653_v22, %v652_v21 }
 0x15c   :  { %v583_v24 = vadd.f32 %v689_v20, %v654_v23 }
 0x15e   :  { %586 = vst [vmem:[#allocation7] sm:$0x3] %v583_v24 }
 0x15f   :  { %791 = shalt.err (!%p788_p3)
}
 0x160   :  { %s792_s15 = scalar_lea.hbm %s985_s4, 32 }
 0x161   :  { %p793_p4 = scmp.ne.s32.totalorder %s985_s4, %s792_s15  ;;  %p796_p5 = scmp.lt.u32.totalorder %s792_s15, %s985_s4 }
 0x163   :  { %p798_p6 = pnand %p796_p5, %p793_p4 }
 0x165   :  { %801 = shalt.err (!%p798_p6)
}
 0x166   :  { %596 = dma.vmem_to_hbm [thread:$0]  %s594_s11, 32, %s985_s4, [#allocation6]  }
 0x167   :  { %804 = dma.done.wait [#allocation6], 32  }
 0x168   :  { %805 = vsyncadd [#allocation6], 4294967264 }
 0x169   :  { %600 = vsyncpa [#allocation5], 1 }
 0x16a   :  { %601 = vsyncpa [#allocation6], 1 }

</bundles_post_ra>
